<compile_context>
chip_gen: v7x
topology: tpu7x:2x2x1
jax: 0.10.0
libtpu: 0.0.40
codegen_flags: <defaults>
</compile_context>

<pallas_src>
import math
import functools

import jax
import jax.numpy as jnp
from jax import lax
from jax.experimental import pallas as pl
from jax.experimental.pallas import tpu as pltpu


# ---------------------------------------------------------------------------
# Tiled dense matmul kernel:  o = x @ w (+ b).
# Operands cast to bf16 per-block inside the body (no-op if already bf16),
# f32 accumulation in VMEM scratch.
# ---------------------------------------------------------------------------
def _matmul_kernel(*refs, n_k, use_bias):
    if use_bias:
        x_ref, w_ref, b_ref, o_ref, acc_ref = refs
    else:
        x_ref, w_ref, o_ref, acc_ref = refs
        b_ref = None
    k = pl.program_id(2)

    @pl.when(k == 0)
    def _():
        acc_ref[...] = jnp.zeros_like(acc_ref)

    acc_ref[...] += jnp.dot(x_ref[...].astype(jnp.bfloat16),
                            w_ref[...].astype(jnp.bfloat16),
                            preferred_element_type=jnp.float32)

    @pl.when(k == n_k - 1)
    def _():
        out = acc_ref[...]
        if use_bias:
            out = out + b_ref[...]
        o_ref[...] = out.astype(o_ref.dtype)


def _pick_tile(dim, target, align, allow_partial):
    """Largest `align`-multiple tile <= target that divides dim; else fall back.

    K (reduction) tiles must divide exactly (allow_partial=False); M/N tiles may
    rely on Pallas boundary-block masking (allow_partial=True)."""
    if dim <= target:
        return dim
    t = (target // align) * align
    while t >= align:
        if dim % t == 0:
            return t
        t -= align
    return (target // align) * align if allow_partial else dim


def dense(x, w, b=None, *, out_dtype=jnp.float32):
    """x: (M, K), w: (K, N) bf16 (already transposed vs. torch), b: (1, N)/ (N,) or None."""
    M, K = x.shape
    K2, N = w.shape
    assert K == K2
    # 512-class M/N tiles, 1024-class K (full K when small).  Double-buffered
    # bf16 footprint ~8-10 MiB: fits v5e/v6e and v7x's 64 MiB physical VMEM.
    tm = _pick_tile(M, 512, 8, allow_partial=True)
    tn = _pick_tile(N, 512, 128, allow_partial=True)
    tk = K if K <= 2048 else _pick_tile(K, 1024, 128, allow_partial=False)
    n_k = pl.cdiv(K, tk)
    use_bias = b is not None

    args = [x, w]
    in_specs = [
        pl.BlockSpec((tm, tk), lambda i, j, k: (i, k)),
        pl.BlockSpec((tk, tn), lambda i, j, k: (k, j)),
    ]
    if use_bias:
        b2 = b if b.ndim == 2 else b.reshape(1, N)
        args.append(b2)
        in_specs.append(pl.BlockSpec((1, tn), lambda i, j, k: (0, j)))

    return pl.pallas_call(
        functools.partial(_matmul_kernel, n_k=n_k, use_bias=use_bias),
        out_shape=jax.ShapeDtypeStruct((M, N), out_dtype),
        grid=(pl.cdiv(M, tm), pl.cdiv(N, tn), n_k),
        in_specs=in_specs,
        out_specs=pl.BlockSpec((tm, tn), lambda i, j, k: (i, j)),
        scratch_shapes=[pltpu.VMEM((tm, tn), jnp.float32)],
        compiler_params=pltpu.CompilerParams(
            dimension_semantics=("parallel", "parallel", "arbitrary"),
            vmem_limit_bytes=32 * 1024 * 1024),
    )(*args)


# ---------------------------------------------------------------------------
# Fused SSD kernel: SiLU(q/k/v/g), dt softplus, single-chunk SSD scan
# (mamba_chunk_scan_combined), RMSNorm over head_dim, swish gating.
# One grid step = one batch row, all heads; lane-dense (L, H*D) output slab.
# ---------------------------------------------------------------------------
def _ssd_kernel(proj_ref, a_ref, dtb_ref, gw_ref, o_ref, *, H, D, L, eps):
    HD = H * D
    slab = proj_ref[0]                                     # (L, 4*HD + H) bf16

    # One batched SiLU over q|k|v|g — the gate swish is the same silu, folded in.
    act = jax.nn.silu(slab[:, :4 * HD].astype(jnp.float32))          # (L, 4*HD)
    dt_all = slab[:, 4 * HD:4 * HD + H].astype(jnp.float32)          # (L, H)

    a_row = a_ref[...]                            # (1, H)  A (negative) per head
    db_row = dtb_ref[...]                         # (1, H)  dt_bias per head
    gw = gw_ref[...]                              # (1, D)  g_norm weight

    # dt_eff = softplus(dt + dt_bias)  (torch F.softplus, threshold=20),
    # without ever evaluating exp() of a large argument.
    z = dt_all + db_row
    dt_eff = jnp.where(z > 20.0, z, jnp.log1p(jnp.exp(jnp.minimum(z, 20.0))))  # (L, H)
    dA = dt_eff * a_row                                                         # (L, H)

    # Causal mask, built once and reused for all heads.
    t_idx = lax.broadcasted_iota(jnp.int32, (L, L), 0)
    s_idx = lax.broadcasted_iota(jnp.int32, (L, L), 1)
    causal = s_idx <= t_idx

    # Inclusive prefix-sum of dA over time for ALL heads with a single
    # (L,L)x(L,H) MXU matmul (H-lane result, amortized across heads), f32.
    tri = causal.astype(jnp.float32)
    cumA = jnp.dot(tri, dA, preferred_element_type=jnp.float32)   # (L, H)
    cumA_t = cumA.T                                               # (H, L), one XLU transpose

    bf16 = jnp.bfloat16
    for h in range(H):
        Ch = act[:, h * D:(h + 1) * D]                                   # C  (L, D)
        Bh = act[:, HD + h * D:HD + (h + 1) * D] * dt_eff[:, h:h + 1]    # B·dt folded in
        xh = act[:, 2 * HD + h * D:2 * HD + (h + 1) * D]                 # x  (L, D)
        gh = act[:, 3 * HD + h * D:3 * HD + (h + 1) * D]                 # silu(g) already

        # C · Bᵀ with the transpose folded into the matmul (no explicit .T),
        # bf16 MXU operands, f32 accumulation.
        cb = lax.dot_general(Ch.astype(bf16), Bh.astype(bf16),
                             dimension_numbers=(((1,), (1,)), ((), ())),
                             preferred_element_type=jnp.float32)         # (L, L)

        # Mask the exponent: exp(-inf) == 0 in the non-causal region, so no
        # inf/NaN is ever formed and no extra select on the product is needed.
        log_decay = jnp.where(causal, cumA[:, h:h + 1] - cumA_t[h:h + 1, :], -jnp.inf)
        scores = cb * jnp.exp(log_decay)                                 # (L, L)

        yh = jnp.dot(scores.astype(bf16), xh.astype(bf16),
                     preferred_element_type=jnp.float32)                 # (L, D)

        # Module ordering: RMSNorm over head_dim first, then swish gate.
        var = jnp.mean(yh * yh, axis=-1, keepdims=True)
        ynorm = yh * lax.rsqrt(var + eps) * gw

        # Direct per-head store into the lane-dense slab (no trailing concat;
        # each head's temporaries die here).
        o_ref[0, :, h * D:(h + 1) * D] = (ynorm * gh).astype(o_ref.dtype)


def ssd_gated(proj, A, dt_bias, gnorm_w, *, H, D, eps):
    """proj: (B, L, 4*H*D + H) bf16 fused projection output [q|k|v|g|dt]."""
    B, L, Ntot = proj.shape
    HD = H * D
    assert Ntot == 4 * HD + H
    # Single-chunk quadratic SSD is only equivalent to mamba_chunk_scan_combined
    # for seq_len <= chunk_size.
    assert L <= 128, "seq_len must be <= chunk_size (128) for the single-chunk SSD form"

    return pl.pallas_call(
        functools.partial(_ssd_kernel, H=H, D=D, L=L, eps=eps),
        out_shape=jax.ShapeDtypeStruct((B, L, HD), jnp.bfloat16),
        grid=(B,),
        in_specs=[
            pl.BlockSpec((1, L, Ntot), lambda b: (b, 0, 0)),   # fused projections (bf16)
            pl.BlockSpec((1, H), lambda b: (0, 0)),            # A per head
            pl.BlockSpec((1, H), lambda b: (0, 0)),            # dt_bias per head
            pl.BlockSpec((1, D), lambda b: (0, 0)),            # g_norm weight
        ],
        out_specs=pl.BlockSpec((1, L, HD), lambda b: (b, 0, 0)),
        compiler_params=pltpu.CompilerParams(
            dimension_semantics=("parallel",),                 # sharded across TCs on v7x
            vmem_limit_bytes=32 * 1024 * 1024),
    )(proj,
      A.reshape(1, H).astype(jnp.float32),
      dt_bias.reshape(1, H).astype(jnp.float32),
      gnorm_w.reshape(1, D).astype(jnp.float32))


# ---------------------------------------------------------------------------
# Parameter init (deterministic, mirrors the module's __init__ shapes/logic).
# Projection weights are fused + pre-cast to bf16 HERE, once, so the per-call
# path contains no weight concatenation or dtype-conversion passes.
# ---------------------------------------------------------------------------
def init_params(key, hidden_size, num_heads, head_dim, num_kv_heads):
    H, D, KVH = num_heads, head_dim, num_kv_heads
    HD = H * D
    ks = jax.random.split(key, 12)

    def unif(k, shape, bound):
        return jax.random.uniform(k, shape, jnp.float32, -bound, bound)

    b_in = 1.0 / math.sqrt(hidden_size)
    wq = unif(ks[0], (hidden_size, H * D), b_in)
    bq = unif(ks[1], (H * D,), b_in)
    wk = unif(ks[2], (hidden_size, KVH * D), b_in)
    bk = unif(ks[3], (KVH * D,), b_in)
    wv = unif(ks[4], (hidden_size, KVH * D), b_in)
    bv = unif(ks[5], (KVH * D,), b_in)
    wo = unif(ks[6], (H * D, hidden_size), 1.0 / math.sqrt(H * D))
    w_in = jnp.zeros((hidden_size, H), jnp.float32)          # mimic_init: in_proj zeroed
    # g_proj: xavier_uniform with gain 2**-2.5, no bias
    bound_g = (2.0 ** -2.5) * math.sqrt(6.0 / (hidden_size + H * D))
    wg = unif(ks[7], (hidden_size, H * D), bound_g)

    p = {}
    p["W_cat"] = jnp.concatenate([wq, wk, wv, wg, w_in], axis=1).astype(jnp.bfloat16)
    p["b_cat"] = jnp.concatenate(
        [bq, bk, bv, jnp.zeros((HD,), jnp.float32), jnp.zeros((H,), jnp.float32)]
    ).reshape(1, 4 * HD + H)
    p["wo"] = wo.astype(jnp.bfloat16)
    # g_norm (RMSNorm) weight
    p["gnorm_w"] = jnp.ones((D,), jnp.float32)
    # dt_bias (mimic_init): inv softplus of dt ~ logU(0.001, 0.1)
    u = jax.random.uniform(ks[8], (H,), jnp.float32)
    dt = jnp.exp(u * (math.log(0.1) - math.log(0.001)) + math.log(0.001))
    dt = jnp.maximum(dt, 1e-3)
    p["dt_bias"] = dt + jnp.log(-jnp.expm1(-dt))
    # A_log_bias (mimic_init): ones  ->  A = -exp(1)
    p["A_log"] = jnp.ones((H,), jnp.float32)
    return p


# ---------------------------------------------------------------------------
# Forward: fused projection matmul -> SSD kernel -> o_proj matmul.
# No JAX-level transposes / weight concats / dtype passes in the call path.
# ---------------------------------------------------------------------------
def mamba2_forward(hidden_states, p, *, num_heads, head_dim, num_kv_heads, eps=1e-5):
    b, l, hidden = hidden_states.shape
    H, D, KVH = num_heads, head_dim, num_kv_heads
    assert KVH == H, "non-conv path of Mamba2 requires num_key_value_heads == num_heads"
    assert hidden == H * D, "module requires hidden_size == num_heads * head_dim"
    HD = H * D

    x2d = hidden_states.reshape(b * l, hidden)

    # Fused q/k/v/g/in projections: one tiled matmul (bf16 MXU, f32 accumulate),
    # bf16 intermediate written to HBM.
    proj = dense(x2d, p["W_cat"], p["b_cat"],
                 out_dtype=jnp.bfloat16).reshape(b, l, 4 * HD + H)

    A = -jnp.exp(p["A_log"])                                           # (H,)

    # SSD scan + g_norm + swish gate; output already in (b, l, H*D) layout, bf16.
    o = ssd_gated(proj, A, p["dt_bias"], p["gnorm_w"], H=H, D=D, eps=eps)

    # Output projection (no bias), f32 result.
    out = dense(o.reshape(b * l, HD), p["wo"],
                out_dtype=jnp.float32).reshape(b, l, hidden)
    # use_D=False, use_short_conv=False in this config.
    # TODO(synk): use_short_conv depthwise causal conv1d path not implemented (disabled by default)
    return out


if __name__ == "__main__":
    hidden_size, num_heads, head_dim = 32, 4, 8
    num_kv_heads = 4
    batch, seq = 2, 8

    key = jax.random.PRNGKey(0)
    k_param, k_x = jax.random.split(key)
    params = init_params(k_param, hidden_size, num_heads, head_dim, num_kv_heads)
    hidden_states = jax.random.normal(k_x, (batch, seq, hidden_size), dtype=jnp.float32)

    fwd = jax.jit(functools.partial(
        mamba2_forward, num_heads=num_heads, head_dim=head_dim,
        num_kv_heads=num_kv_heads, eps=1e-5))
    out = fwd(hidden_states, params)
    jax.block_until_ready(out)
    assert out.shape == (batch, seq, hidden_size)
    print("KERNEL_OK")
</pallas_src>

<mosaic_0001>
module attributes {stable_mosaic.version = 11 : i64} {
  func.func @_matmul_kernel(%arg0: i32, %arg1: i32, %arg2: i32, %arg3: memref<16x32xbf16, #tpu.memory_space<vmem>>, %arg4: memref<32x32xbf16, #tpu.memory_space<vmem>>, %arg5: memref<16x32xf32, #tpu.memory_space<vmem>>, %arg6: memref<16x32xf32, #tpu.memory_space<vmem>>) attributes {dimension_semantics = [#tpu.dimension_semantics<parallel>, #tpu.dimension_semantics<parallel>, #tpu.dimension_semantics<arbitrary>], iteration_bounds = array<i64: 1, 1, 1>, scalar_prefetch = 0 : i64, scratch_operands = 1 : i64, tpu.core_type = #tpu.core_type<tc>, window_params = [{transform_indices = @transform_0, window_bounds = array<i64: 16, 32>}, {transform_indices = @transform_1, window_bounds = array<i64: 32, 32>}, {transform_indices = @transform_2, window_bounds = array<i64: 16, 32>}]} {
    %c0_i32 = arith.constant 0 : i32
    %0 = arith.cmpi eq, %arg2, %c0_i32 : i32
    %1 = arith.extui %0 : i1 to i32
    %c0_i32_0 = arith.constant 0 : i32
    %2 = arith.cmpi ne, %1, %c0_i32_0 : i32
    scf.if %2 {
      %cst_10 = arith.constant 0.000000e+00 : f32
      %12 = vector.broadcast %cst_10 : f32 to vector<16x32xf32>
      %c0_11 = arith.constant 0 : index
      %c0_12 = arith.constant 0 : index
      %13 = vector.load %arg6[%c0_11, %c0_12] : memref<16x32xf32, #tpu.memory_space<vmem>>, vector<16x32xf32>
      tpu.vector_store %arg6[%c0_11, %c0_12], %12 {strides = array<i32>} : memref<16x32xf32, #tpu.memory_space<vmem>>, vector<16x32xf32>,
    } else {
    }
    %c0 = arith.constant 0 : index
    %c0_1 = arith.constant 0 : index
    %3 = vector.load %arg6[%c0, %c0_1] : memref<16x32xf32, #tpu.memory_space<vmem>>, vector<16x32xf32>
    %c0_2 = arith.constant 0 : index
    %c0_3 = arith.constant 0 : index
    %4 = vector.load %arg3[%c0_2, %c0_3] : memref<16x32xbf16, #tpu.memory_space<vmem>>, vector<16x32xbf16>
    %c0_4 = arith.constant 0 : index
    %c0_5 = arith.constant 0 : index
    %5 = vector.load %arg4[%c0_4, %c0_5] : memref<32x32xbf16, #tpu.memory_space<vmem>>, vector<32x32xbf16>
    %cst = arith.constant dense<0.000000e+00> : vector<16x32xf32>
    %6 = tpu.matmul %4, %5, %cst {dimension_numbers = #tpu.dot_dimension_numbers<[1], [0], [0], [1], [0, 0, 1, 1], [], []>} : vector<16x32xbf16>, vector<32x32xbf16>, vector<16x32xf32> -> vector<16x32xf32>
    %7 = arith.addf %3, %6 : vector<16x32xf32>
    %c0_6 = arith.constant 0 : index
    %c0_7 = arith.constant 0 : index
    %8 = vector.load %arg6[%c0_6, %c0_7] : memref<16x32xf32, #tpu.memory_space<vmem>>, vector<16x32xf32>
    tpu.vector_store %arg6[%c0_6, %c0_7], %7 {strides = array<i32>} : memref<16x32xf32, #tpu.memory_space<vmem>>, vector<16x32xf32>,
    %c0_i32_8 = arith.constant 0 : i32
    %9 = arith.cmpi eq, %arg2, %c0_i32_8 : i32
    %10 = arith.extui %9 : i1 to i32
    %c0_i32_9 = arith.constant 0 : i32
    %11 = arith.cmpi ne, %10, %c0_i32_9 : i32
    scf.if %11 {
      %c0_10 = arith.constant 0 : index
      %c0_11 = arith.constant 0 : index
      %12 = vector.load %arg6[%c0_10, %c0_11] : memref<16x32xf32, #tpu.memory_space<vmem>>, vector<16x32xf32>
      %c0_12 = arith.constant 0 : index
      %c0_13 = arith.constant 0 : index
      %13 = vector.load %arg5[%c0_12, %c0_13] : memref<16x32xf32, #tpu.memory_space<vmem>>, vector<16x32xf32>
      tpu.vector_store %arg5[%c0_12, %c0_13], %12 {strides = array<i32>} : memref<16x32xf32, #tpu.memory_space<vmem>>, vector<16x32xf32>,
    } else {
    }
    return
  }
  func.func @transform_0(%arg0: i32, %arg1: i32, %arg2: i32) -> (i32, i32) {
    %c0_i32 = arith.constant 0 : i32
    return %arg0, %arg2 : i32, i32
  }
  func.func @transform_1(%arg0: i32, %arg1: i32, %arg2: i32) -> (i32, i32) {
    %c0_i32 = arith.constant 0 : i32
    return %arg2, %arg1 : i32, i32
  }
  func.func @transform_2(%arg0: i32, %arg1: i32, %arg2: i32) -> (i32, i32) {
    %c0_i32 = arith.constant 0 : i32
    return %arg0, %arg1 : i32, i32
  }
}

module attributes {stable_mosaic.version = 11 : i64} {
  func.func @_ssd_kernel(%arg0: i32, %arg1: memref<1x8x132xbf16, #tpu.memory_space<vmem>>, %arg2: memref<1x4xf32, #tpu.memory_space<vmem>>, %arg3: memref<1x4xf32, #tpu.memory_space<vmem>>, %arg4: memref<1x8xf32, #tpu.memory_space<vmem>>, %arg5: memref<1x8x32xbf16, #tpu.memory_space<vmem>>) attributes {dimension_semantics = [#tpu.dimension_semantics<parallel>], iteration_bounds = array<i64: 2>, scalar_prefetch = 0 : i64, scratch_operands = 0 : i64, tpu.core_type = #tpu.core_type<tc>, window_params = [{transform_indices = @transform_0, window_bounds = array<i64: 1, 8, 132>}, {pipeline_mode = #tpu.pipeline_mode<synchronous>, transform_indices = @transform_1, window_bounds = array<i64: 1, 4>}, {pipeline_mode = #tpu.pipeline_mode<synchronous>, transform_indices = @transform_2, window_bounds = array<i64: 1, 4>}, {pipeline_mode = #tpu.pipeline_mode<synchronous>, transform_indices = @transform_3, window_bounds = array<i64: 1, 8>}, {transform_indices = @transform_4, window_bounds = array<i64: 1, 8, 32>}]} {
    %c0 = arith.constant 0 : index
    %c0_0 = arith.constant 0 : index
    %c0_1 = arith.constant 0 : index
    %0 = vector.load %arg1[%c0, %c0_0, %c0_1] : memref<1x8x132xbf16, #tpu.memory_space<vmem>>, vector<1x8x132xbf16>
    %1 = vector.shape_cast %0 : vector<1x8x132xbf16> to vector<8x132xbf16>
    %2 = vector.extract_strided_slice %1 {offsets = [0, 0], sizes = [8, 128], strides = [1, 1]} : vector<8x132xbf16> to vector<8x128xbf16>
    %3 = arith.extf %2 : vector<8x128xbf16> to vector<8x128xf32>
    %4 = arith.negf %3 : vector<8x128xf32>
    %5 = math.exp %4 : vector<8x128xf32>
    %cst = arith.constant 1.000000e+00 : f32
    %6 = vector.broadcast %cst : f32 to vector<8x128xf32>
    %7 = arith.addf %6, %5 : vector<8x128xf32>
    %8 = arith.divf %6, %7 : vector<8x128xf32>
    %9 = arith.mulf %3, %8 : vector<8x128xf32>
    %10 = vector.extract_strided_slice %1 {offsets = [0, 128], sizes = [8, 4], strides = [1, 1]} : vector<8x132xbf16> to vector<8x4xbf16>
    %11 = arith.extf %10 : vector<8x4xbf16> to vector<8x4xf32>
    %c0_2 = arith.constant 0 : index
    %c0_3 = arith.constant 0 : index
    %12 = vector.load %arg2[%c0_2, %c0_3] : memref<1x4xf32, #tpu.memory_space<vmem>>, vector<1x4xf32>
    %c0_4 = arith.constant 0 : index
    %c0_5 = arith.constant 0 : index
    %13 = vector.load %arg3[%c0_4, %c0_5] : memref<1x4xf32, #tpu.memory_space<vmem>>, vector<1x4xf32>
    %c0_6 = arith.constant 0 : index
    %c0_7 = arith.constant 0 : index
    %14 = vector.load %arg4[%c0_6, %c0_7] : memref<1x8xf32, #tpu.memory_space<vmem>>, vector<1x8xf32>
    %15 = vector.broadcast %13 : vector<1x4xf32> to vector<8x4xf32>
    %16 = arith.addf %11, %15 : vector<8x4xf32>
    %cst_8 = arith.constant 2.000000e+01 : f32
    %17 = vector.broadcast %cst_8 : f32 to vector<8x4xf32>
    %18 = arith.cmpf ogt, %16, %17 : vector<8x4xf32>
    %cst_9 = arith.constant 2.000000e+01 : f32
    %19 = vector.broadcast %cst_9 : f32 to vector<8x4xf32>
    %20 = arith.minimumf %16, %19 : vector<8x4xf32>
    %21 = math.exp %20 : vector<8x4xf32>
    %22 = math.log1p %21 : vector<8x4xf32>
    %23 = arith.select %18, %16, %22 : vector<8x4xi1>, vector<8x4xf32>
    %24 = vector.broadcast %12 : vector<1x4xf32> to vector<8x4xf32>
    %25 = arith.mulf %23, %24 : vector<8x4xf32>
    %26 = tpu.iota {dimensions = array<i32: 0>} : vector<8x8xi32>
    %27 = tpu.iota {dimensions = array<i32: 1>} : vector<8x8xi32>
    %28 = arith.cmpi sle, %27, %26 : vector<8x8xi32>
    %29 = arith.extui %28 : vector<8x8xi1> to vector<8x8xi32>
    %30 = arith.sitofp %29 : vector<8x8xi32> to vector<8x8xf32>
    %cst_10 = arith.constant dense<0.000000e+00> : vector<8x4xf32>
    %31 = tpu.matmul %30, %25, %cst_10 {dimension_numbers = #tpu.dot_dimension_numbers<[1], [0], [0], [1], [0, 0, 1, 1], [], []>} : vector<8x8xf32>, vector<8x4xf32>, vector<8x4xf32> -> vector<8x4xf32>
    %32 = tpu.transpose %31, [1, 0] : vector<8x4xf32> -> vector<4x8xf32>
    %33 = vector.extract_strided_slice %9 {offsets = [0, 0], sizes = [8, 8], strides = [1, 1]} : vector<8x128xf32> to vector<8x8xf32>
    %34 = vector.extract_strided_slice %9 {offsets = [0, 32], sizes = [8, 8], strides = [1, 1]} : vector<8x128xf32> to vector<8x8xf32>
    %35 = vector.extract_strided_slice %23 {offsets = [0, 0], sizes = [8, 1], strides = [1, 1]} : vector<8x4xf32> to vector<8x1xf32>
    %36 = vector.broadcast %35 : vector<8x1xf32> to vector<8x8xf32>
    %37 = arith.mulf %34, %36 : vector<8x8xf32>
    %38 = vector.extract_strided_slice %9 {offsets = [0, 64], sizes = [8, 8], strides = [1, 1]} : vector<8x128xf32> to vector<8x8xf32>
    %39 = vector.extract_strided_slice %9 {offsets = [0, 96], sizes = [8, 8], strides = [1, 1]} : vector<8x128xf32> to vector<8x8xf32>
    %40 = arith.truncf %33 : vector<8x8xf32> to vector<8x8xbf16>
    %41 = arith.truncf %37 : vector<8x8xf32> to vector<8x8xbf16>
    %cst_11 = arith.constant dense<0.000000e+00> : vector<8x8xf32>
    %42 = tpu.matmul %40, %41, %cst_11 {dimension_numbers = #tpu.dot_dimension_numbers<[1], [1], [0], [0], [0, 0, 1, 0], [], []>} : vector<8x8xbf16>, vector<8x8xbf16>, vector<8x8xf32> -> vector<8x8xf32>
    %43 = vector.extract_strided_slice %31 {offsets = [0, 0], sizes = [8, 1], strides = [1, 1]} : vector<8x4xf32> to vector<8x1xf32>
    %44 = vector.extract_strided_slice %32 {offsets = [0, 0], sizes = [1, 8], strides = [1, 1]} : vector<4x8xf32> to vector<1x8xf32>
    %45 = vector.broadcast %43 : vector<8x1xf32> to vector<8x8xf32>
    %46 = vector.broadcast %44 : vector<1x8xf32> to vector<8x8xf32>
    %47 = arith.subf %45, %46 : vector<8x8xf32>
    %cst_12 = arith.constant 0xFF800000 : f32
    %48 = vector.broadcast %cst_12 : f32 to vector<8x8xf32>
    %49 = arith.select %28, %47, %48 : vector<8x8xi1>, vector<8x8xf32>
    %50 = math.exp %49 : vector<8x8xf32>
    %51 = arith.mulf %42, %50 : vector<8x8xf32>
    %52 = arith.truncf %51 : vector<8x8xf32> to vector<8x8xbf16>
    %53 = arith.truncf %38 : vector<8x8xf32> to vector<8x8xbf16>
    %cst_13 = arith.constant dense<0.000000e+00> : vector<8x8xf32>
    %54 = tpu.matmul %52, %53, %cst_13 {dimension_numbers = #tpu.dot_dimension_numbers<[1], [0], [0], [1], [0, 0, 1, 1], [], []>} : vector<8x8xbf16>, vector<8x8xbf16>, vector<8x8xf32> -> vector<8x8xf32>
    %55 = arith.mulf %54, %54 : vector<8x8xf32>
    %cst_14 = arith.constant dense<0.000000e+00> : vector<8xf32>
    %56 = vector.multi_reduction <add>, %55, %cst_14 [1] : vector<8x8xf32> to vector<8xf32>
    %57 = vector.shape_cast %56 : vector<8xf32> to vector<8x1xf32>
    %cst_15 = arith.constant 8.000000e+00 : f32
    %58 = vector.broadcast %cst_15 : f32 to vector<8x1xf32>
    %59 = arith.divf %57, %58 : vector<8x1xf32>
    %cst_16 = arith.constant 9.99999974E-6 : f32
    %60 = vector.broadcast %cst_16 : f32 to vector<8x1xf32>
    %61 = arith.addf %59, %60 : vector<8x1xf32>
    %62 = math.rsqrt %61 : vector<8x1xf32>
    %63 = vector.broadcast %62 : vector<8x1xf32> to vector<8x8xf32>
    %64 = arith.mulf %54, %63 : vector<8x8xf32>
    %65 = vector.broadcast %14 : vector<1x8xf32> to vector<8x8xf32>
    %66 = arith.mulf %64, %65 : vector<8x8xf32>
    %67 = arith.mulf %66, %39 : vector<8x8xf32>
    %68 = arith.truncf %67 : vector<8x8xf32> to vector<8x8xbf16>
    %c0_17 = arith.constant 0 : index
    %c0_18 = arith.constant 0 : index
    %c0_19 = arith.constant 0 : index
    %69 = vector.load %arg5[%c0_17, %c0_18, %c0_19] : memref<1x8x32xbf16, #tpu.memory_space<vmem>>, vector<1x8x8xbf16>
    %70 = vector.shape_cast %69 : vector<1x8x8xbf16> to vector<8x8xbf16>
    %71 = vector.shape_cast %68 : vector<8x8xbf16> to vector<1x8x8xbf16>
    tpu.vector_store %arg5[%c0_17, %c0_18, %c0_19], %71 {strides = array<i32>} : memref<1x8x32xbf16, #tpu.memory_space<vmem>>, vector<1x8x8xbf16>,
    %72 = vector.extract_strided_slice %9 {offsets = [0, 8], sizes = [8, 8], strides = [1, 1]} : vector<8x128xf32> to vector<8x8xf32>
    %73 = vector.extract_strided_slice %9 {offsets = [0, 40], sizes = [8, 8], strides = [1, 1]} : vector<8x128xf32> to vector<8x8xf32>
    %74 = vector.extract_strided_slice %23 {offsets = [0, 1], sizes = [8, 1], strides = [1, 1]} : vector<8x4xf32> to vector<8x1xf32>
    %75 = vector.broadcast %74 : vector<8x1xf32> to vector<8x8xf32>
    %76 = arith.mulf %73, %75 : vector<8x8xf32>
    %77 = vector.extract_strided_slice %9 {offsets = [0, 72], sizes = [8, 8], strides = [1, 1]} : vector<8x128xf32> to vector<8x8xf32>
    %78 = vector.extract_strided_slice %9 {offsets = [0, 104], sizes = [8, 8], strides = [1, 1]} : vector<8x128xf32> to vector<8x8xf32>
    %79 = arith.truncf %72 : vector<8x8xf32> to vector<8x8xbf16>
    %80 = arith.truncf %76 : vector<8x8xf32> to vector<8x8xbf16>
    %cst_20 = arith.constant dense<0.000000e+00> : vector<8x8xf32>
    %81 = tpu.matmul %79, %80, %cst_20 {dimension_numbers = #tpu.dot_dimension_numbers<[1], [1], [0], [0], [0, 0, 1, 0], [], []>} : vector<8x8xbf16>, vector<8x8xbf16>, vector<8x8xf32> -> vector<8x8xf32>
    %82 = vector.extract_strided_slice %31 {offsets = [0, 1], sizes = [8, 1], strides = [1, 1]} : vector<8x4xf32> to vector<8x1xf32>
    %83 = vector.extract_strided_slice %32 {offsets = [1, 0], sizes = [1, 8], strides = [1, 1]} : vector<4x8xf32> to vector<1x8xf32>
    %84 = vector.broadcast %82 : vector<8x1xf32> to vector<8x8xf32>
    %85 = vector.broadcast %83 : vector<1x8xf32> to vector<8x8xf32>
    %86 = arith.subf %84, %85 : vector<8x8xf32>
    %cst_21 = arith.constant 0xFF800000 : f32
    %87 = vector.broadcast %cst_21 : f32 to vector<8x8xf32>
    %88 = arith.select %28, %86, %87 : vector<8x8xi1>, vector<8x8xf32>
    %89 = math.exp %88 : vector<8x8xf32>
    %90 = arith.mulf %81, %89 : vector<8x8xf32>
    %91 = arith.truncf %90 : vector<8x8xf32> to vector<8x8xbf16>
    %92 = arith.truncf %77 : vector<8x8xf32> to vector<8x8xbf16>
    %cst_22 = arith.constant dense<0.000000e+00> : vector<8x8xf32>
    %93 = tpu.matmul %91, %92, %cst_22 {dimension_numbers = #tpu.dot_dimension_numbers<[1], [0], [0], [1], [0, 0, 1, 1], [], []>} : vector<8x8xbf16>, vector<8x8xbf16>, vector<8x8xf32> -> vector<8x8xf32>
    %94 = arith.mulf %93, %93 : vector<8x8xf32>
    %cst_23 = arith.constant dense<0.000000e+00> : vector<8xf32>
    %95 = vector.multi_reduction <add>, %94, %cst_23 [1] : vector<8x8xf32> to vector<8xf32>
    %96 = vector.shape_cast %95 : vector<8xf32> to vector<8x1xf32>
    %cst_24 = arith.constant 8.000000e+00 : f32
    %97 = vector.broadcast %cst_24 : f32 to vector<8x1xf32>
    %98 = arith.divf %96, %97 : vector<8x1xf32>
    %cst_25 = arith.constant 9.99999974E-6 : f32
    %99 = vector.broadcast %cst_25 : f32 to vector<8x1xf32>
    %100 = arith.addf %98, %99 : vector<8x1xf32>
    %101 = math.rsqrt %100 : vector<8x1xf32>
    %102 = vector.broadcast %101 : vector<8x1xf32> to vector<8x8xf32>
    %103 = arith.mulf %93, %102 : vector<8x8xf32>
    %104 = vector.broadcast %14 : vector<1x8xf32> to vector<8x8xf32>
    %105 = arith.mulf %103, %104 : vector<8x8xf32>
    %106 = arith.mulf %105, %78 : vector<8x8xf32>
    %107 = arith.truncf %106 : vector<8x8xf32> to vector<8x8xbf16>
    %c0_26 = arith.constant 0 : index
    %c0_27 = arith.constant 0 : index
    %c8 = arith.constant 8 : index
    %108 = vector.load %arg5[%c0_26, %c0_27, %c8] : memref<1x8x32xbf16, #tpu.memory_space<vmem>>, vector<1x8x8xbf16>
    %109 = vector.shape_cast %108 : vector<1x8x8xbf16> to vector<8x8xbf16>
    %110 = vector.shape_cast %107 : vector<8x8xbf16> to vector<1x8x8xbf16>
    tpu.vector_store %arg5[%c0_26, %c0_27, %c8], %110 {strides = array<i32>} : memref<1x8x32xbf16, #tpu.memory_space<vmem>>, vector<1x8x8xbf16>,
    %111 = vector.extract_strided_slice %9 {offsets = [0, 16], sizes = [8, 8], strides = [1, 1]} : vector<8x128xf32> to vector<8x8xf32>
    %112 = vector.extract_strided_slice %9 {offsets = [0, 48], sizes = [8, 8], strides = [1, 1]} : vector<8x128xf32> to vector<8x8xf32>
    %113 = vector.extract_strided_slice %23 {offsets = [0, 2], sizes = [8, 1], strides = [1, 1]} : vector<8x4xf32> to vector<8x1xf32>
    %114 = vector.broadcast %113 : vector<8x1xf32> to vector<8x8xf32>
    %115 = arith.mulf %112, %114 : vector<8x8xf32>
    %116 = vector.extract_strided_slice %9 {offsets = [0, 80], sizes = [8, 8], strides = [1, 1]} : vector<8x128xf32> to vector<8x8xf32>
    %117 = vector.extract_strided_slice %9 {offsets = [0, 112], sizes = [8, 8], strides = [1, 1]} : vector<8x128xf32> to vector<8x8xf32>
    %118 = arith.truncf %111 : vector<8x8xf32> to vector<8x8xbf16>
    %119 = arith.truncf %115 : vector<8x8xf32> to vector<8x8xbf16>
    %cst_28 = arith.constant dense<0.000000e+00> : vector<8x8xf32>
    %120 = tpu.matmul %118, %119, %cst_28 {dimension_numbers = #tpu.dot_dimension_numbers<[1], [1], [0], [0], [0, 0, 1, 0], [], []>} : vector<8x8xbf16>, vector<8x8xbf16>, vector<8x8xf32> -> vector<8x8xf32>
    %121 = vector.extract_strided_slice %31 {offsets = [0, 2], sizes = [8, 1], strides = [1, 1]} : vector<8x4xf32> to vector<8x1xf32>
    %122 = vector.extract_strided_slice %32 {offsets = [2, 0], sizes = [1, 8], strides = [1, 1]} : vector<4x8xf32> to vector<1x8xf32>
    %123 = vector.broadcast %121 : vector<8x1xf32> to vector<8x8xf32>
    %124 = vector.broadcast %122 : vector<1x8xf32> to vector<8x8xf32>
    %125 = arith.subf %123, %124 : vector<8x8xf32>
    %cst_29 = arith.constant 0xFF800000 : f32
    %126 = vector.broadcast %cst_29 : f32 to vector<8x8xf32>
    %127 = arith.select %28, %125, %126 : vector<8x8xi1>, vector<8x8xf32>
    %128 = math.exp %127 : vector<8x8xf32>
    %129 = arith.mulf %120, %128 : vector<8x8xf32>
    %130 = arith.truncf %129 : vector<8x8xf32> to vector<8x8xbf16>
    %131 = arith.truncf %116 : vector<8x8xf32> to vector<8x8xbf16>
    %cst_30 = arith.constant dense<0.000000e+00> : vector<8x8xf32>
    %132 = tpu.matmul %130, %131, %cst_30 {dimension_numbers = #tpu.dot_dimension_numbers<[1], [0], [0], [1], [0, 0, 1, 1], [], []>} : vector<8x8xbf16>, vector<8x8xbf16>, vector<8x8xf32> -> vector<8x8xf32>
    %133 = arith.mulf %132, %132 : vector<8x8xf32>
    %cst_31 = arith.constant dense<0.000000e+00> : vector<8xf32>
    %134 = vector.multi_reduction <add>, %133, %cst_31 [1] : vector<8x8xf32> to vector<8xf32>
    %135 = vector.shape_cast %134 : vector<8xf32> to vector<8x1xf32>
    %cst_32 = arith.constant 8.000000e+00 : f32
    %136 = vector.broadcast %cst_32 : f32 to vector<8x1xf32>
    %137 = arith.divf %135, %136 : vector<8x1xf32>
    %cst_33 = arith.constant 9.99999974E-6 : f32
    %138 = vector.broadcast %cst_33 : f32 to vector<8x1xf32>
    %139 = arith.addf %137, %138 : vector<8x1xf32>
    %140 = math.rsqrt %139 : vector<8x1xf32>
    %141 = vector.broadcast %140 : vector<8x1xf32> to vector<8x8xf32>
    %142 = arith.mulf %132, %141 : vector<8x8xf32>
    %143 = vector.broadcast %14 : vector<1x8xf32> to vector<8x8xf32>
    %144 = arith.mulf %142, %143 : vector<8x8xf32>
    %145 = arith.mulf %144, %117 : vector<8x8xf32>
    %146 = arith.truncf %145 : vector<8x8xf32> to vector<8x8xbf16>
    %c0_34 = arith.constant 0 : index
    %c0_35 = arith.constant 0 : index
    %c16 = arith.constant 16 : index
    %147 = vector.load %arg5[%c0_34, %c0_35, %c16] : memref<1x8x32xbf16, #tpu.memory_space<vmem>>, vector<1x8x8xbf16>
    %148 = vector.shape_cast %147 : vector<1x8x8xbf16> to vector<8x8xbf16>
    %149 = vector.shape_cast %146 : vector<8x8xbf16> to vector<1x8x8xbf16>
    tpu.vector_store %arg5[%c0_34, %c0_35, %c16], %149 {strides = array<i32>} : memref<1x8x32xbf16, #tpu.memory_space<vmem>>, vector<1x8x8xbf16>,
    %150 = vector.extract_strided_slice %9 {offsets = [0, 24], sizes = [8, 8], strides = [1, 1]} : vector<8x128xf32> to vector<8x8xf32>
    %151 = vector.extract_strided_slice %9 {offsets = [0, 56], sizes = [8, 8], strides = [1, 1]} : vector<8x128xf32> to vector<8x8xf32>
    %152 = vector.extract_strided_slice %23 {offsets = [0, 3], sizes = [8, 1], strides = [1, 1]} : vector<8x4xf32> to vector<8x1xf32>
    %153 = vector.broadcast %152 : vector<8x1xf32> to vector<8x8xf32>
    %154 = arith.mulf %151, %153 : vector<8x8xf32>
    %155 = vector.extract_strided_slice %9 {offsets = [0, 88], sizes = [8, 8], strides = [1, 1]} : vector<8x128xf32> to vector<8x8xf32>
    %156 = vector.extract_strided_slice %9 {offsets = [0, 120], sizes = [8, 8], strides = [1, 1]} : vector<8x128xf32> to vector<8x8xf32>
    %157 = arith.truncf %150 : vector<8x8xf32> to vector<8x8xbf16>
    %158 = arith.truncf %154 : vector<8x8xf32> to vector<8x8xbf16>
    %cst_36 = arith.constant dense<0.000000e+00> : vector<8x8xf32>
    %159 = tpu.matmul %157, %158, %cst_36 {dimension_numbers = #tpu.dot_dimension_numbers<[1], [1], [0], [0], [0, 0, 1, 0], [], []>} : vector<8x8xbf16>, vector<8x8xbf16>, vector<8x8xf32> -> vector<8x8xf32>
    %160 = vector.extract_strided_slice %31 {offsets = [0, 3], sizes = [8, 1], strides = [1, 1]} : vector<8x4xf32> to vector<8x1xf32>
    %161 = vector.extract_strided_slice %32 {offsets = [3, 0], sizes = [1, 8], strides = [1, 1]} : vector<4x8xf32> to vector<1x8xf32>
    %162 = vector.broadcast %160 : vector<8x1xf32> to vector<8x8xf32>
    %163 = vector.broadcast %161 : vector<1x8xf32> to vector<8x8xf32>
    %164 = arith.subf %162, %163 : vector<8x8xf32>
    %cst_37 = arith.constant 0xFF800000 : f32
    %165 = vector.broadcast %cst_37 : f32 to vector<8x8xf32>
    %166 = arith.select %28, %164, %165 : vector<8x8xi1>, vector<8x8xf32>
    %167 = math.exp %166 : vector<8x8xf32>
    %168 = arith.mulf %159, %167 : vector<8x8xf32>
    %169 = arith.truncf %168 : vector<8x8xf32> to vector<8x8xbf16>
    %170 = arith.truncf %155 : vector<8x8xf32> to vector<8x8xbf16>
    %cst_38 = arith.constant dense<0.000000e+00> : vector<8x8xf32>
    %171 = tpu.matmul %169, %170, %cst_38 {dimension_numbers = #tpu.dot_dimension_numbers<[1], [0], [0], [1], [0, 0, 1, 1], [], []>} : vector<8x8xbf16>, vector<8x8xbf16>, vector<8x8xf32> -> vector<8x8xf32>
    %172 = arith.mulf %171, %171 : vector<8x8xf32>
    %cst_39 = arith.constant dense<0.000000e+00> : vector<8xf32>
    %173 = vector.multi_reduction <add>, %172, %cst_39 [1] : vector<8x8xf32> to vector<8xf32>
    %174 = vector.shape_cast %173 : vector<8xf32> to vector<8x1xf32>
    %cst_40 = arith.constant 8.000000e+00 : f32
    %175 = vector.broadcast %cst_40 : f32 to vector<8x1xf32>
    %176 = arith.divf %174, %175 : vector<8x1xf32>
    %cst_41 = arith.constant 9.99999974E-6 : f32
    %177 = vector.broadcast %cst_41 : f32 to vector<8x1xf32>
    %178 = arith.addf %176, %177 : vector<8x1xf32>
    %179 = math.rsqrt %178 : vector<8x1xf32>
    %180 = vector.broadcast %179 : vector<8x1xf32> to vector<8x8xf32>
    %181 = arith.mulf %171, %180 : vector<8x8xf32>
    %182 = vector.broadcast %14 : vector<1x8xf32> to vector<8x8xf32>
    %183 = arith.mulf %181, %182 : vector<8x8xf32>
    %184 = arith.mulf %183, %156 : vector<8x8xf32>
    %185 = arith.truncf %184 : vector<8x8xf32> to vector<8x8xbf16>
    %c0_42 = arith.constant 0 : index
    %c0_43 = arith.constant 0 : index
    %c24 = arith.constant 24 : index
    %186 = vector.load %arg5[%c0_42, %c0_43, %c24] : memref<1x8x32xbf16, #tpu.memory_space<vmem>>, vector<1x8x8xbf16>
    %187 = vector.shape_cast %186 : vector<1x8x8xbf16> to vector<8x8xbf16>
    %188 = vector.shape_cast %185 : vector<8x8xbf16> to vector<1x8x8xbf16>
    tpu.vector_store %arg5[%c0_42, %c0_43, %c24], %188 {strides = array<i32>} : memref<1x8x32xbf16, #tpu.memory_space<vmem>>, vector<1x8x8xbf16>,
    return
  }
  func.func @transform_0(%arg0: i32) -> (i32, i32, i32) {
    %c0_i32 = arith.constant 0 : i32
    %c0_i32_0 = arith.constant 0 : i32
    %c0_i32_1 = arith.constant 0 : i32
    return %arg0, %c0_i32, %c0_i32_0 : i32, i32, i32
  }
  func.func @transform_1(%arg0: i32) -> (i32, i32) {
    %c0_i32 = arith.constant 0 : i32
    %c0_i32_0 = arith.constant 0 : i32
    %c0_i32_1 = arith.constant 0 : i32
    return %c0_i32, %c0_i32_0 : i32, i32
  }
  func.func @transform_2(%arg0: i32) -> (i32, i32) {
    %c0_i32 = arith.constant 0 : i32
    %c0_i32_0 = arith.constant 0 : i32
    %c0_i32_1 = arith.constant 0 : i32
    return %c0_i32, %c0_i32_0 : i32, i32
  }
  func.func @transform_3(%arg0: i32) -> (i32, i32) {
    %c0_i32 = arith.constant 0 : i32
    %c0_i32_0 = arith.constant 0 : i32
    %c0_i32_1 = arith.constant 0 : i32
    return %c0_i32, %c0_i32_0 : i32, i32
  }
  func.func @transform_4(%arg0: i32) -> (i32, i32, i32) {
    %c0_i32 = arith.constant 0 : i32
    %c0_i32_0 = arith.constant 0 : i32
    %c0_i32_1 = arith.constant 0 : i32
    return %arg0, %c0_i32, %c0_i32_0 : i32, i32, i32
  }
}

module attributes {stable_mosaic.version = 11 : i64} {
  func.func @_matmul_kernel(%arg0: i32, %arg1: i32, %arg2: i32, %arg3: memref<16x32xf32, #tpu.memory_space<vmem>>, %arg4: memref<32x132xbf16, #tpu.memory_space<vmem>>, %arg5: memref<1x132xf32, #tpu.memory_space<vmem>>, %arg6: memref<16x132xbf16, #tpu.memory_space<vmem>>, %arg7: memref<16x132xf32, #tpu.memory_space<vmem>>) attributes {dimension_semantics = [#tpu.dimension_semantics<parallel>, #tpu.dimension_semantics<parallel>, #tpu.dimension_semantics<arbitrary>], iteration_bounds = array<i64: 1, 1, 1>, scalar_prefetch = 0 : i64, scratch_operands = 1 : i64, tpu.core_type = #tpu.core_type<tc>, window_params = [{transform_indices = @transform_0, window_bounds = array<i64: 16, 32>}, {transform_indices = @transform_1, window_bounds = array<i64: 32, 132>}, {transform_indices = @transform_2, window_bounds = array<i64: 1, 132>}, {transform_indices = @transform_3, window_bounds = array<i64: 16, 132>}]} {
    %c0_i32 = arith.constant 0 : i32
    %0 = arith.cmpi eq, %arg2, %c0_i32 : i32
    %1 = arith.extui %0 : i1 to i32
    %c0_i32_0 = arith.constant 0 : i32
    %2 = arith.cmpi ne, %1, %c0_i32_0 : i32
    scf.if %2 {
      %cst_10 = arith.constant 0.000000e+00 : f32
      %13 = vector.broadcast %cst_10 : f32 to vector<16x132xf32>
      %c0_11 = arith.constant 0 : index
      %c0_12 = arith.constant 0 : index
      %14 = vector.load %arg7[%c0_11, %c0_12] : memref<16x132xf32, #tpu.memory_space<vmem>>, vector<16x132xf32>
      tpu.vector_store %arg7[%c0_11, %c0_12], %13 {strides = array<i32>} : memref<16x132xf32, #tpu.memory_space<vmem>>, vector<16x132xf32>,
    } else {
    }
    %c0 = arith.constant 0 : index
    %c0_1 = arith.constant 0 : index
    %3 = vector.load %arg7[%c0, %c0_1] : memref<16x132xf32, #tpu.memory_space<vmem>>, vector<16x132xf32>
    %c0_2 = arith.constant 0 : index
    %c0_3 = arith.constant 0 : index
    %4 = vector.load %arg3[%c0_2, %c0_3] : memref<16x32xf32, #tpu.memory_space<vmem>>, vector<16x32xf32>
    %5 = arith.truncf %4 : vector<16x32xf32> to vector<16x32xbf16>
    %c0_4 = arith.constant 0 : index
    %c0_5 = arith.constant 0 : index
    %6 = vector.load %arg4[%c0_4, %c0_5] : memref<32x132xbf16, #tpu.memory_space<vmem>>, vector<32x132xbf16>
    %cst = arith.constant dense<0.000000e+00> : vector<16x132xf32>
    %7 = tpu.matmul %5, %6, %cst {dimension_numbers = #tpu.dot_dimension_numbers<[1], [0], [0], [1], [0, 0, 1, 1], [], []>} : vector<16x32xbf16>, vector<32x132xbf16>, vector<16x132xf32> -> vector<16x132xf32>
    %8 = arith.addf %3, %7 : vector<16x132xf32>
    %c0_6 = arith.constant 0 : index
    %c0_7 = arith.constant 0 : index
    %9 = vector.load %arg7[%c0_6, %c0_7] : memref<16x132xf32, #tpu.memory_space<vmem>>, vector<16x132xf32>
    tpu.vector_store %arg7[%c0_6, %c0_7], %8 {strides = array<i32>} : memref<16x132xf32, #tpu.memory_space<vmem>>, vector<16x132xf32>,
    %c0_i32_8 = arith.constant 0 : i32
    %10 = arith.cmpi eq, %arg2, %c0_i32_8 : i32
    %11 = arith.extui %10 : i1 to i32
    %c0_i32_9 = arith.constant 0 : i32
    %12 = arith.cmpi ne, %11, %c0_i32_9 : i32
    scf.if %12 {
      %c0_10 = arith.constant 0 : index
      %c0_11 = arith.constant 0 : index
      %13 = vector.load %arg7[%c0_10, %c0_11] : memref<16x132xf32, #tpu.memory_space<vmem>>, vector<16x132xf32>
      %c0_12 = arith.constant 0 : index
      %c0_13 = arith.constant 0 : index
      %14 = vector.load %arg5[%c0_12, %c0_13] : memref<1x132xf32, #tpu.memory_space<vmem>>, vector<1x132xf32>
      %15 = vector.broadcast %14 : vector<1x132xf32> to vector<16x132xf32>
      %16 = arith.addf %13, %15 : vector<16x132xf32>
      %17 = arith.truncf %16 : vector<16x132xf32> to vector<16x132xbf16>
      %c0_14 = arith.constant 0 : index
      %c0_15 = arith.constant 0 : index
      %18 = vector.load %arg6[%c0_14, %c0_15] : memref<16x132xbf16, #tpu.memory_space<vmem>>, vector<16x132xbf16>
      tpu.vector_store %arg6[%c0_14, %c0_15], %17 {strides = array<i32>} : memref<16x132xbf16, #tpu.memory_space<vmem>>, vector<16x132xbf16>,
    } else {
    }
    return
  }
  func.func @transform_0(%arg0: i32, %arg1: i32, %arg2: i32) -> (i32, i32) {
    %c0_i32 = arith.constant 0 : i32
    return %arg0, %arg2 : i32, i32
  }
  func.func @transform_1(%arg0: i32, %arg1: i32, %arg2: i32) -> (i32, i32) {
    %c0_i32 = arith.constant 0 : i32
    return %arg2, %arg1 : i32, i32
  }
  func.func @transform_2(%arg0: i32, %arg1: i32, %arg2: i32) -> (i32, i32) {
    %c0_i32 = arith.constant 0 : i32
    %c0_i32_0 = arith.constant 0 : i32
    return %c0_i32, %arg1 : i32, i32
  }
  func.func @transform_3(%arg0: i32, %arg1: i32, %arg2: i32) -> (i32, i32) {
    %c0_i32 = arith.constant 0 : i32
    return %arg0, %arg1 : i32, i32
  }
}

</mosaic_0001>

<bundles_post_ra>
// kernel: mamba2_forward.5
= control target key start
LH: loop header
LB: loop body
LE: loop exit
PB: predicated region body
PF: predicated region fallthrough
CT: control target
= control target key end

     0   :  { %v164_v1 = vmov 0.0   ;;  %vm165_vm0 = vmmov 0   ;;  %vm17_vm1 = vcmask 261120   ;;  %s212_s0 = inlined_call_operand.vmem [shape: bf16[16,32], index: 0, kind: input, shape index: {}]   ;;  %s213_s1 = inlined_call_operand.vmem [shape: bf16[32,32], index: 1, kind: input, shape index: {}]   ;;  %s214_s2 = inlined_call_operand.hbm [shape: f32[16,32], index: 2, kind: output, shape index: {}]  }
   0x1   :  { %v137_v0 = vld [vmem:[%s213_s1] sm:$0xff]   ;;  %124 = vmatprep.subr.bf16.mxu0 %v164_v1  ;;  %v138_v2 = vld [vmem:[%s213_s1 + $0x8] sm:$0xff]   ;;  %128 = vmatprep.mubr.msk.bf16.mxu0 %vm165_vm0, %v164_v1  ;;  %18 = vst.msk [vmem:[#allocation2] sm:$0xff] %vm17_vm1, %v164_v1  ;;  %19 = vst.msk [vmem:[#allocation2 + $0x8] sm:$0xff] %vm17_vm1, %v164_v1 }
   0x2   :  { %125 = vmatpush3.bf16.msra.mxu0 %v137_v0 }
   0x3   :  { %126 = vmatprep.subr.bf16.mxu0 %v164_v1 }
   0x4   :  { %7 = vsyncpa [#allocation4], 0  ;;  %v139_v3 = vld [vmem:[%s212_s0] sm:$0xff]   ;;  %s166_s1 = smov [#allocation3]  }
   0x5   :  { %s106_s15 = sshll.u32 %s166_s1, 4  ;;  %s107_s15 = int_to_ptr.vmem [resolvable:$true] %s106_s15 }
   0x6   :  { %127 = vmatpush3.bf16.msra.mxu0 %v138_v2  ;;  %s140_s0 = scalar_lea.vmem %s107_s15, 256  ;;  %p145_p1 = scmp.lt.s32.totalorder %s107_s15, %s107_s15 }
   0x7   :  { %p141_p0 = scmp.ne.s32.totalorder %s107_s15, %s140_s0  ;;  %p146_p2 = scmp.lt.s32.totalorder %s140_s0, %s140_s0 }
   0x8   :  { %v20_v4 = vld [vmem:[#allocation2] sm:$0xff]  ;;  %v21_v6 = vld [vmem:[#allocation2 + $0x8] sm:$0xff] }
   0x9   :  { %129 = vmatmul.mubr.msk.bf16.vlgmr.msra.gmra.mrb[0].mxu0 %vm17_vm1, %v139_v3  ;;  %p147_p3 = por %p146_p2, %p145_p1 }
   0xb   :  { %p148_p4 = pnand %p147_p3, %p141_p0 }
  0xdc   :  { %v83_v5 = vpop.f32.mrb[0].mxu0 }
  0xdd   :  { %v90_v7 = vadd.f32 %v83_v5, %v20_v4  ;;  %v130_v8 = vpop.f32.mrb[1].mxu0 }
  0xde   :  { %v86_v9 = vpop.f32.mrb[2].mxu0 }
  0xdf   :  { %92 = vst.msk [vmem:[#allocation2] sm:$0xff] %vm17_vm1, %v90_v7  ;;  %v91_v10 = vadd.f32 %v86_v9, %v21_v6  ;;  %v131_v11 = vpop.f32.mrb[3].mxu0 }
  0xe1   :  { %93 = vst.msk [vmem:[#allocation2 + $0x8] sm:$0xff] %vm17_vm1, %v91_v10 }
  0xe6   :  { %v97_v12 = vld [vmem:[#allocation2] sm:$0xff] }
  0xe7   :  { %99 = vst.msk [vmem:[#allocation3] sm:$0xff] %vm17_vm1, %v97_v12 }
  0xe8   :  { %v98_v13 = vld [vmem:[#allocation2 + $0x8] sm:$0xff] }
  0xe9   :  { %100 = vst.msk [vmem:[#allocation3 + $0x8] sm:$0xff] %vm17_vm1, %v98_v13 }
  0xea   :  { %151 = shalt.err (!%p148_p4)
}
  0xeb   :  { %s152_s18 = scalar_lea.hbm %s214_s2, 256 }
  0xec   :  { %p153_p5 = scmp.ne.s32.totalorder %s214_s2, %s152_s18  ;;  %p156_p6 = scmp.lt.u32.totalorder %s152_s18, %s214_s2 }
  0xee   :  { %p158_p7 = pnand %p156_p6, %p153_p5 }
  0xf0   :  { %161 = shalt.err (!%p158_p7)
}
  0xf1   :  { %s167_s23 = smov 128   ;;  %s168_s24 = smov 8  }
  0xf2   :  { %112 = dma.vmem_to_hbm [thread:$0]  %s107_s15, 256, %s214_s2, [#allocation4], %s167_s23, %s167_s23, %s168_s24  }
  0xf3   :  { %162 = dma.done.wait [#allocation4], 256  }
  0xf4   :  { %163 = vsyncadd [#allocation4], 4294967040 }
  0xf5   :  { %116 = vsyncpa [#allocation4], 1 }

// kernel: mamba2_forward.3
= control target key start
LH: loop header
LB: loop body
LE: loop exit
PB: predicated region body
PF: predicated region fallthrough
CT: control target
= control target key end

     0   :  { %8 = vsyncpa [#allocation4], 0  ;;  %s317_s0 = inlined_call_operand.hbm [shape: f32[16,32], index: 0, kind: input, shape index: {}]   ;;  %s318_s1 = inlined_call_operand.hbm [shape: bf16[32,132], index: 1, kind: input, shape index: {}]   ;;  %s319_s2 = inlined_call_operand.vmem [shape: f32[1,132], index: 2, kind: input, shape index: {}]   ;;  %s320_s3 = inlined_call_operand.vmem [shape: bf16[16,132], index: 3, kind: output, shape index: {}]  }
   0x1   :  { %9 = vsyncpa [#allocation6], 0  ;;  %s254_s12 = smov [#allocation3]   ;;  %s206_s16 = scalar_lea.hbm %s317_s0, 256 }
   0x2   :  { %s15_s13 = sshll.u32 %s254_s12, 4  ;;  %p207_p0 = scmp.ne.s32.totalorder %s317_s0, %s206_s16  ;;  %s16_s13 = int_to_ptr.vmem [resolvable:$true] %s15_s13 }
   0x3   :  { %p210_p1 = scmp.lt.u32.totalorder %s206_s16, %s317_s0 }
   0x5   :  { %p212_p2 = pnand %p210_p1, %p207_p0 }
   0x7   :  { %215 = shalt.err (!%p212_p2)
}
   0x8   :  { %s216_s21 = scalar_lea.vmem %s16_s13, 256  ;;  %p221_p4 = scmp.lt.s32.totalorder %s16_s13, %s16_s13 }
   0x9   :  { %p217_p3 = scmp.ne.s32.totalorder %s16_s13, %s216_s21  ;;  %p222_p5 = scmp.lt.s32.totalorder %s216_s21, %s216_s21 }
   0xb   :  { %p223_p6 = por %p222_p5, %p221_p4 }
   0xd   :  { %p224_p7 = pnand %p223_p6, %p217_p3 }
   0xf   :  { %227 = shalt.err (!%p224_p7)
}
  0x10   :  { %s255_s22 = smov 128   ;;  %s256_s23 = smov 8  }
  0x11   :  { %21 = dma.hbm_to_vmem [thread:$0]  %s317_s0, 256, %s16_s13, [#allocation4], %s255_s22, %s255_s22, %s256_s23  }
  0x12   :  { %s257_s26 = smov [#allocation5]   ;;  %s228_s30 = scalar_lea.hbm %s318_s1, 512 }
  0x13   :  { %s27_s27 = sshll.u32 %s257_s26, 4  ;;  %p229_p8 = scmp.ne.s32.totalorder %s318_s1, %s228_s30  ;;  %s28_s27 = int_to_ptr.vmem [resolvable:$true] %s27_s27 }
  0x14   :  { %p232_p9 = scmp.lt.u32.totalorder %s228_s30, %s318_s1 }
  0x16   :  { %p234_p10 = pnand %p232_p9, %p229_p8 }
  0x18   :  { %237 = shalt.err (!%p234_p10)
}
  0x19   :  { %s238_s8 = scalar_lea.vmem %s28_s27, 512  ;;  %p243_p12 = scmp.lt.s32.totalorder %s28_s27, %s28_s27 }
  0x1a   :  { %p239_p11 = scmp.ne.s32.totalorder %s28_s27, %s238_s8  ;;  %p244_p13 = scmp.lt.s32.totalorder %s238_s8, %s238_s8 }
  0x1c   :  { %p245_p0 = por %p244_p13, %p243_p12 }
  0x1e   :  { %p246_p1 = pnand %p245_p0, %p239_p11 }
  0x20   :  { %249 = shalt.err (!%p246_p1)
}
  0x21   :  { %33 = dma.hbm_to_vmem [thread:$0]  %s318_s1, 512, %s28_s27, [#allocation6], %s255_s22, %s255_s22, %s256_s23  }
  0x22   :  { %250 = dma.done.wait [#allocation4], 256  }
  0x23   :  { %251 = vsyncadd [#allocation4], 4294967040 }
  0x24   :  { %252 = dma.done.wait [#allocation6], 512  }
  0x25   :  { %253 = vsyncadd [#allocation6], 4294966784  ;;  %v258_v0 = vmov 0   ;;  %v200_v1 = vld [vmem:[#allocation5 + $0x4] ss:$8 sps:$4 sm:$0xff]   ;;  %v56_v5 = vld [vmem:[#allocation3] sm:$0xff]  ;;  %v148_v9 = vlaneseq }
  0x26   :  { %119 = vmatprep.mubr.bf16.mxu0 %v258_v0  ;;  %v202_v2 = vld [vmem:[#allocation5] ss:$8 sps:$4 sm:$0xff]   ;;  %87 = vmatprep.subr.bf16.mxu0 %v200_v1  ;;  %v203_v3 = vld [vmem:[#allocation5 + $0x14] ss:$8 sps:$4 sm:$0xff]   ;;  %v205_v4 = vld [vmem:[#allocation5 + $0x10] ss:$8 sps:$4 sm:$0xff]  }
  0x27   :  { %88 = vmatpush1.bf16.msra.mxu0 %v202_v2  ;;  %v57_v6 = vld [vmem:[#allocation3 + $0x8] sm:$0xff]  ;;  %vm83_vm0 = vcmask 261120   ;;  %vm48_vm1 = vcmask 31744   ;;  %v259_v8 = vmov 0.0   ;;  %v149_v12 = vshrl.u32 %v148_v9, 7 }
  0x28   :  { %89 = vmatprep.subr.bf16.mxu0 %v203_v3  ;;  %v58_v7 = vpack.c.bf16 %v57_v6, %v56_v5  ;;  %49 = vst.msk [vmem:[#allocation2 + $0x8] sm:$0xff] %vm48_vm1, %v259_v8  ;;  %51 = vst.msk [vmem:[#allocation2 + $0x18] sm:$0xff] %vm48_vm1, %v259_v8  ;;  %v146_v21 = vld [vmem:[%s319_s2] sm:$0x3]  ;;  %vm174_vm2 = vcmask 1043456   ;;  %vm175_vm3 = vcmask 31748  }
  0x29   :  { %v150_v18 = vsub.s32 0, %v149_v12  ;;  %v154_v19 = vsub.s32 1, %v149_v12  ;;  %vm176_vm4 = vmor %vm175_vm3, %vm174_vm2 }
  0x2b   :  { %90 = vmatpush1.bf16.msra.mxu0 %v205_v4  ;;  %v151_v22 = vrot.slane %v146_v21, %v150_v18  ;;  %v155_v23 = vrot.slane %v146_v21, %v154_v19 }
  0x2e   :  { %189 = vmatmul.mubr.msk.bf16.vlgmr.msra.gmra.mrb[0].mxu0 %vm83_vm0, %v58_v7 }
  0x2f   :  { %v53_v10 = vld [vmem:[#allocation2 + $0x8] sm:$0xff]  ;;  %v55_v14 = vld [vmem:[#allocation2 + $0x18] sm:$0xff] }
 0x101   :  { %v121_v11 = vpop.f32.mrb[0].mxu0 }
 0x102   :  { %v123_v13 = vpop.f32.mrb[1].mxu0  ;;  %v158_v25 = vadd.f32 %v151_v22, %v121_v11 }
 0x103   :  { %v131_v15 = vadd.f32 %v123_v13, %v53_v10  ;;  %v125_v16 = vpop.f32.mrb[2].mxu0 }
 0x104   :  { %v127_v17 = vpop.f32.mrb[3].mxu0  ;;  %v160_v29 = vadd.f32 %v151_v22, %v125_v16 }
 0x105   :  { %136 = vst.msk [vmem:[#allocation2 + $0x8] sm:$0xff] %vm48_vm1, %v131_v15  ;;  %v133_v20 = vadd.f32 %v127_v17, %v55_v14 }
 0x107   :  { %138 = vst.msk [vmem:[#allocation2 + $0x18] sm:$0xff] %vm48_vm1, %v133_v20 }
 0x10c   :  { %v143_v24 = vld [vmem:[#allocation2 + $0x8] sm:$0xff] }
 0x10d   :  { %v159_v26 = vadd.f32 %v155_v23, %v143_v24 }
 0x10e   :  { %v145_v27 = vld [vmem:[#allocation2 + $0x18] sm:$0xff] }
 0x10f   :  { %v192_v28 = vpack.c.bf16 %v159_v26, %v158_v25  ;;  %v161_v30 = vadd.f32 %v155_v23, %v145_v27 }
 0x111   :  { %177 = vst.msk [vmem:[%s320_s3] sm:$0xff] %vm176_vm4, %v192_v28  ;;  %v193_v31 = vpack.c.bf16 %v161_v30, %v160_v29 }
 0x113   :  { %178 = vst.msk [vmem:[%s320_s3 + $0x8] sm:$0xff] %vm176_vm4, %v193_v31 }
 0x114   :  { %183 = vsyncpa [#allocation4], 1 }
 0x115   :  { %184 = vsyncpa [#allocation6], 1 }

// kernel: mamba2_forward.4
= control target key start
LH: loop header
LB: loop body
LE: loop exit
PB: predicated region body
PF: predicated region fallthrough
CT: control target
= control target key end

     0   :  { %s1193_s15 = smov 0   ;;  %s1316_s0 = inlined_call_operand.vmem [shape: bf16[2,8,132], index: 0, kind: input, shape index: {}]   ;;  %s1317_s1 = inlined_call_operand.vmem [shape: f32[1,4], index: 1, kind: input, shape index: {}]   ;;  %s1318_s2 = inlined_call_operand.vmem [shape: f32[1,4], index: 2, kind: input, shape index: {}]   ;;  %s1319_s3 = inlined_call_operand.vmem [shape: f32[1,8], index: 3, kind: input, shape index: {}]   ;;  %s1320_s4 = inlined_call_operand.vmem [shape: bf16[2,8,32], index: 4, kind: output, shape index: {}]  }
   0x1 LB: > { %s976_s16 = sadd.s32 4294967295, %s1145_s15   ;;  %p980_p0 = scmp.ge.s32.totalorder %s1145_s15, 1  ;;  %s1145_s15 = sphi %s1193_s15, %s14_s15  }
   0x2   : > { %p162_p1 = scmp.lt.s32.totalorder %s1145_s15, 3 }
   0x4   : > { %p163_p2 = pnand %p980_p0, %p162_p1 }
   0x5   : > { %p187_p3 = scmp.lt.s32.totalorder (!%p163_p2), %s976_s16, 1  ;;  %v1147_v0 = vmov (!%p163_p2), 0   ;;  %v1148_v1 = vmov (!%p163_p2), 0.0   ;;  %vm1149_vm0 = vmmov (!%p163_p2), 0   ;;  %v1150_v2 = vmov (!%p163_p2), 1   ;;  %s1153_s25 = smov (!%p163_p2), 64  }
   0x6   : > { %166 = sbr.rel (%p163_p2) target bundleno = 1262 (0x4ee), region = 36  ;;  %1107 = vset.pattern.permute.xlu0 (!%p163_p2), %v1147_v0  ;;  %1025 = vmatprep.subr.mxu0 (!%p163_p2), %v1148_v1  ;;  %v985_v5 = vld [vmem:[%s1318_s2] ss:$0 sm:$0xff] (!%p163_p2)  ;;  %v241_v17 = vlaneseq (!%p163_p2)  ;;  %vm248_vm4 = vcmask (!%p163_p2), 64512   ;;  %v1151_v32 = vmov (!%p163_p2), 2   ;;  %v1152_v33 = vmov (!%p163_p2), 3  }
   0x7   : > { %1027 = vmatprep.mubr.msk.f32.mxu0 (!%p163_p2), %vm1149_vm0, %v1148_v1  ;;  %1108 = vset.pattern.permute.xlu1 (!%p163_p2), %v1150_v2  ;;  %v986_v25 = vld [vmem:[%s1317_s1] ss:$0 sm:$0xff] (!%p163_p2)  ;;  %s1154_s26 = smov (!%p163_p2), 96   ;;  %s1155_s27 = smov (!%p163_p2), 88   ;;  %vm432_vm5 = vcmask (!%p163_p2), 1043456   ;;  %vm498_vm6 = vcmask (!%p163_p2), 60416  }
   0x8   : > { %1030 = vmatprep.subr.bf16.mxu1 (!%p163_p2), %v1148_v1  ;;  %1032 = vmatprep.mubr.msk.bf16.mxu1 (!%p163_p2), %vm1149_vm0, %v1148_v1  ;;  %v1217_v20 = vshrl.u32 (!%p163_p2), %v241_v17, 7  ;;  %v244_v21 = vand.u32 (!%p163_p2), 127, %v241_v17  ;;  %s1156_s28 = smov (!%p163_p2), 120   ;;  %s1157_s29 = smov (!%p163_p2), 80   ;;  %vm639_vm7 = vcmask (!%p163_p2), 126016   ;;  %vm780_vm8 = vcmask (!%p163_p2), 191616  }
   0x9   : > { %s1158_s30 = smov (!%p163_p2), 112   ;;  %s1159_s5 = smov (!%p163_p2), 72   ;;  %vm921_vm9 = vcmask (!%p163_p2), 257216  }
   0xa   : > { %vm1223_vm3 = vcmp.le.s32.totalorder (!%p163_p2), %v244_v21, %v1217_v20  ;;  %s1160_s6 = smov (!%p163_p2), 104   ;;  %s1161_s7 = smov (!%p163_p2), 56   ;;  %v418_v55 = vsub.s32 (!%p163_p2), 0, %v1217_v20  ;;  %v704_v21 = vsub.s32 (!%p163_p2), 2, %v1217_v20 }
   0xb   : > { %v987_v30 = vsel (!%p163_p2), %vm1223_vm3, 1.0, %v1148_v1  ;;  %s1162_s8 = smov (!%p163_p2), 48   ;;  %s1163_s9 = smov (!%p163_p2), 40  }
   0xc   : > { %s1164_s10 = smov (!%p163_p2), 16   ;;  %s1165_s11 = smov (!%p163_p2), 32  }
   0xd   : > { %s1324_s16 = smov (!%p187_p3, %s976_s16), 1  ;;  %s1166_s12 = smov 24  }
   0xe   : > { %s1003_s17 = sshll.u32 %s1324_s16, 3  ;;  %s1167_s13 = smov 8  }
   0xf   : > { %s191_s20 = scalar_lea.vmem %s1316_s0, %s1003_s17  ;;  %s983_s18 = sshll.u32 %s1324_s16, 2 }
  0x10   : > { %v197_v3 = vld [vmem:[%s191_s20] sm:$0xff]  ;;  %s195_s21 = scalar_lea.vmem %s1320_s4, %s983_s18 }
  0x11   : > { %v207_v4 = vrot.slane %v197_v3, 4  ;;  %v198_v9 = vunpack.c.l.bf16 %v197_v3 }
  0x13   : > { %v209_v6 = vunpack.c.l.bf16 %v207_v4  ;;  %v984_v11 = vmul.f32 -1.442695, %v198_v9 }
  0x15   : > { %v219_v7 = vadd.f32 %v985_v5, %v209_v6 }
  0x17   : > { %v221_v8 = vmin.f32 %v219_v7, 20.0  ;;  %vm220_vm2 = vcmp.gt.f32.partialorder %v219_v7, 20.0 }
  0x19   : > { %v222_v10 = vmul.f32 1.442695, %v221_v8 }
  0x1b   : > { %1115 = vpow2.f32 %v222_v10 }
  0x1c   : > { %1117 = vpow2.f32 %v984_v11 }
  0x25   : > { %v1116_v12 = vpop.eup %1115 }
  0x26   : > { %v224_v13 = vadd.f32 1.0, %v1116_v12  ;;  %v1118_v14 = vpop.eup %1117  ;;  %v227_v15 = vmul.f32 -0.5, %v1116_v12  ;;  %v230_v19 = vand.u32 2147483647, %v1116_v12 }
  0x27   : > { %v202_v16 = vadd.f32 1.0, %v1118_v14 }
  0x28   : > { %1119 = vlog2.f32 %v224_v13  ;;  %v228_v18 = vadd.f32 1.0, %v227_v15  ;;  %vm231_vm1 = vcmp.lt.f32.partialorder %v230_v19, 0.0004427343 }
  0x29   : > { %1121 = vrcp.f32 %v202_v16  ;;  %v563_v16 = vsub.s32 1, %v1217_v20 }
  0x2a   : > { %v229_v22 = vmul.f32 %v1116_v12, %v228_v18 }
  0x32   : > { %v1120_v23 = vpop.eup %1119 }
  0x33   : > { %v226_v24 = vmul.f32 0.6931472, %v1120_v23  ;;  %v1122_v31 = vpop.eup %1121 }
  0x34   : > { %v1234_v34 = vmul.f32 %v1122_v31, %v198_v9 }
  0x35   : > { %v232_v27 = vsel %vm231_vm1, %v229_v22, %v226_v24 }
  0x36   : > { %v233_v28 = vsel %vm220_vm2, %v219_v7, %v232_v27  ;;  %v360_v35 = vpack.c.bf16 %v1234_v34, %v1234_v34 }
  0x37   : > { %356 = vperm.xlu0 %1107, %v233_v28   ;;  %v240_v29 = vmul.f32 %v986_v25, %v233_v28  ;;  %501 = vperm.xlu1 %1108, %v233_v28  }
  0x39   : > { %1026 = vmatpush3.msra.mxu0 %v240_v29 }
  0x3a   : > { %1028 = vmatmul.mubr.msk.f32.vlgmr.msra.gmra.mrb[0].mxu0 %vm248_vm4, %v987_v30  ;;  %1036 = vmatprep.subr.bf16.mxu0 %v1148_v1 }
  0x3b   : > { %1109 = vset.pattern.permute.xlu1 %v1151_v32  ;;  %1038 = vmatprep.mubr.msk.bf16.mxu0 %vm1149_vm0, %v1148_v1 }
  0x3c   : > { %642 = vperm.xlu1 %1109, %v233_v28   ;;  %1110 = vset.pattern.permute.xlu0 %v1152_v33 }
  0x40   : > { %1111 = vset.pattern.permute.xlu1 %v1147_v0 }
  0x41   : > { %427 = vrot.lane.b32.xlu1 %v360_v35, %s1153_s25 }
  0xb6   : > { %v357_v36 = vpop.permute.xlu0 %356  ;;  %v502_v38 = vpop.permute.xlu1 %501 }
  0xb7   : > { %v359_v37 = vmul.f32 %v357_v36, %v1234_v34  ;;  %v504_v40 = vmul.f32 %v502_v38, %v1234_v34 }
  0xb9   : > { %v361_v39 = vpack.c.bf16 %v359_v37, %v359_v37  ;;  %v505_v41 = vpack.c.bf16 %v504_v40, %v504_v40 }
  0xbb   : > { %363 = vrot.lane.b32.xlu0 %v361_v39, %s1154_s26  ;;  %v643_v42 = vpop.permute.xlu1 %642 }
  0xbc   : > { %v645_v43 = vmul.f32 %v643_v42, %v1234_v34 }
  0xbe   : > { %v646_v44 = vpack.c.bf16 %v645_v43, %v645_v43 }
  0xbf   : > { %783 = vperm.xlu0 %1110, %v233_v28   ;;  %v428_v45 = vpop.permute.xlu1 %427  ;;  %v845_v28 = vsub.s32 3, %v1217_v20 }
  0xc0   : > { %v434_v46 = vsel %vm432_vm5, %v428_v45, 0 }
  0xc1   : > { %1037 = vmatpush3.bf16.msra.mxu0 %v434_v46 }
  0xc2   : > { %1042 = vmatprep.subr.bf16.mxu0 %v1148_v1 }
  0xc3   : > { %509 = vrot.lane.b32.xlu0 %v505_v41, %s1155_s27 }
  0xc4   : > { %1112 = vset.pattern.permute.xlu0 %v1150_v2 }
  0xc7   : > { %506 = vrot.lane.b32.xlu0 %v360_v35, %s1156_s28 }
  0xcb   : > { %650 = vrot.lane.b32.xlu0 %v646_v44, %s1157_s29 }
  0xcf   : > { %647 = vrot.lane.b32.xlu0 %v360_v35, %s1158_s30 }
 0x10d   : > { %v318_v47 = vpop.f32.mrb[0].mxu0 }
 0x10e   : > { %413 = vperm.xlu1 %1111, %v318_v47   ;;  %v1029_v48 = vpop.f32.mrb[1].mxu0 }
 0x12d   : > { %v364_v49 = vpop.permute.xlu0 %363 }
 0x12e   : > { %v369_v50 = vsel %vm248_vm4, %v364_v49, 0 }
 0x12f   : > { %1031 = vmatpush3.bf16.xpose.msra.mxu1 %v369_v50 }
 0x130   : > { %1048 = vmatprep.subr.bf16.mxu1 %v1148_v1 }
 0x136   : > { %1033 = vmatmul.mubr.msk.bf16.vlgmr.msra.gmra.mrb[0].mxu1 %vm248_vm4, %v360_v35 }
 0x137   : > { %322 = vxpose.xlu1.b32.start.end [1/1] (short) (narrow) %v318_v47, 8  ;;  %1050 = vmatprep.mubr.msk.bf16.mxu1 %vm1149_vm0, %v1148_v1 }
 0x13e   : > { %v784_v51 = vpop.permute.xlu0 %783 }
 0x13f   : > { %v786_v52 = vmul.f32 %v784_v51, %v1234_v34 }
 0x141   : > { %v787_v53 = vpack.c.bf16 %v786_v52, %v786_v52 }
 0x142   : > { %v510_v61 = vpop.permute.xlu0 %509 }
 0x143   : > { %791 = vrot.lane.b32.xlu0 %v787_v53, %s1159_s5  ;;  %v515_v5 = vsel %vm248_vm4, %v510_v61, 0 }
 0x146   : > { %v507_v63 = vpop.permute.xlu0 %506 }
 0x147   : > { %788 = vrot.lane.b32.xlu0 %v360_v35, %s1160_s6 }
 0x14a   : > { %v651_v8 = vpop.permute.xlu0 %650 }
 0x14b   : > { %558 = vperm.xlu0 %1112, %v318_v47   ;;  %v656_v9 = vsel %vm248_vm4, %v651_v8, 0 }
 0x14e   : > { %v648_v10 = vpop.permute.xlu0 %647 }
 0x14f   : > { %1113 = vset.pattern.permute.xlu0 %v1151_v32 }
 0x150   : > { %699 = vperm.xlu0 %1113, %v318_v47  }
 0x154   : > { %1114 = vset.pattern.permute.xlu0 %v1152_v33 }
 0x155   : > { %840 = vperm.xlu0 %1114, %v318_v47   ;;  %571 = vrot.lane.b32.xlu1 %v360_v35, %s1161_s7 }
 0x159   : > { %712 = vrot.lane.b32.xlu0 %v360_v35, %s1162_s8 }
 0x15d   : > { %853 = vrot.lane.b32.xlu0 %v360_v35, %s1163_s9 }
 0x18d   : > { %v414_v54 = vpop.permute.xlu1 %413 }
 0x1b5   : > { %v792_v11 = vpop.permute.xlu0 %791 }
 0x1b6   : > { %v797_v12 = vsel %vm248_vm4, %v792_v11, 0 }
 0x1b7   : > { %v338_v56 = vpop.trf.xlu1 }
 0x1b8   : > { %v419_v57 = vrot.slane %v338_v56, %v418_v55  ;;  %v564_v17 = vrot.slane %v338_v56, %v563_v16  ;;  %v705_v23 = vrot.slane %v338_v56, %v704_v21  ;;  %v846_v30 = vrot.slane %v338_v56, %v845_v28 }
 0x1b9   : > { %v789_v13 = vpop.permute.xlu0 %788 }
 0x1ba   : > { %v420_v58 = vsub.f32 %v414_v54, %v419_v57 }
 0x1bc   : > { %v421_v59 = vsel %vm1223_vm3, %v420_v58, -inf }
 0x1bd   : > { %v422_v60 = vmul.f32 1.442695, %v421_v59 }
 0x1bf   : > { %1123 = vpow2.f32 %v422_v60 }
 0x1c7   : > { %v572_v14 = vpop.permute.xlu1 %571 }
 0x1c8   : > { %v577_v15 = vsel %vm432_vm5, %v572_v14, 0 }
 0x1c9   : > { %v1124_v62 = vpop.eup %1123  ;;  %1049 = vmatpush3.bf16.msra.mxu1 %v577_v15 }
 0x1ca   : > { %1060 = vmatprep.subr.bf16.mxu1 %v1148_v1  ;;  %v559_v18 = vpop.permute.xlu0 %558 }
 0x1cb   : > { %v565_v19 = vsub.f32 %v559_v18, %v564_v17 }
 0x1cd   : > { %v566_v22 = vsel %vm1223_vm3, %v565_v19, -inf }
 0x1ce   : > { %v567_v25 = vmul.f32 1.442695, %v566_v22 }
 0x1cf   : > { %v700_v24 = vpop.permute.xlu0 %699 }
 0x1d0   : > { %v706_v27 = vsub.f32 %v700_v24, %v705_v23  ;;  %1125 = vpow2.f32 %v567_v25 }
 0x1d2   : > { %v707_v29 = vsel %vm1223_vm3, %v706_v27, -inf }
 0x1d3   : > { %v708_v35 = vmul.f32 1.442695, %v707_v29  ;;  %v991_v29 = vld [vmem:[%s1319_s3] ss:$0 sm:$0xff] }
 0x1d4   : > { %v841_v31 = vpop.permute.xlu0 %840 }
 0x1d5   : > { %v847_v37 = vsub.f32 %v841_v31, %v846_v30  ;;  %1127 = vpow2.f32 %v708_v35 }
 0x1d7   : > { %v848_v39 = vsel %vm1223_vm3, %v847_v37, -inf }
 0x1d8   : > { %v713_v20 = vpop.permute.xlu0 %712  ;;  %v849_v44 = vmul.f32 1.442695, %v848_v39 }
 0x1d9   : > { %v718_v48 = vsel %vm432_vm5, %v713_v20, 0 }
 0x1da   : > { %v1126_v40 = vpop.eup %1125  ;;  %1129 = vpow2.f32 %v849_v44 }
 0x1dc   : > { %v854_v50 = vpop.permute.xlu0 %853 }
 0x1dd   : > { %v859_v56 = vsel %vm432_vm5, %v854_v50, 0 }
 0x1df   : > { %v1128_v26 = vpop.eup %1127 }
 0x1e4   : > { %v1130_v57 = vpop.eup %1129 }
 0x209   : > { %v405_v0 = vpop.f32.mrb[0].mxu1 }
 0x20a   : > { %v424_v2 = vmul.f32 %v1124_v62, %v405_v0  ;;  %v1034_v3 = vpop.f32.mrb[1].mxu1 }
 0x20b   : > { %v408_v4 = vpop.f32.mrb[2].mxu1 }
 0x20c   : > { %v425_v6 = vpack.c.bf16 %v424_v2, %v424_v2  ;;  %v1035_v7 = vpop.f32.mrb[3].mxu1 }
 0x20e   : > { %1039 = vmatmul.mubr.msk.bf16.vlgmr.msra.gmra.mrb[4].mxu0 %vm248_vm4, %v425_v6 }
 0x20f   : > { %1043 = vmatpush3.bf16.xpose.msra.mxu0 %v515_v5  ;;  %1044 = vmatprep.mubr.msk.bf16.mxu0 %vm1149_vm0, %v1148_v1 }
 0x210   : > { %1054 = vmatprep.subr.bf16.mxu0 %v1148_v1 }
 0x216   : > { %1045 = vmatmul.mubr.msk.bf16.vlgmr.msra.gmra.mrb[8].mxu0 %vm248_vm4, %v507_v63 }
 0x217   : > { %1055 = vmatpush3.bf16.xpose.msra.mxu0 %v656_v9  ;;  %1056 = vmatprep.mubr.msk.bf16.mxu0 %vm1149_vm0, %v1148_v1 }
 0x218   : > { %1066 = vmatprep.subr.bf16.mxu0 %v1148_v1 }
 0x21e   : > { %1057 = vmatmul.mubr.msk.bf16.vlgmr.msra.gmra.mrb[12].mxu0 %vm248_vm4, %v648_v10 }
 0x21f   : > { %1067 = vmatpush3.bf16.xpose.msra.mxu0 %v797_v12  ;;  %1068 = vmatprep.mubr.msk.bf16.mxu0 %vm1149_vm0, %v1148_v1 }
 0x226   : > { %1069 = vmatmul.mubr.msk.bf16.vlgmr.msra.gmra.mrb[16].mxu0 %vm248_vm4, %v789_v13 }
 0x2e1   : > { %v1277_v32 = vpop.f32.mrb[4].mxu0 }
 0x2e2   : > { %v1040_v33 = vpop.f32.mrb[5].mxu0  ;;  %v476_v18 = vmul.f32 %v1277_v32, %v1277_v32 }
 0x2e3   : > { %v473_v36 = vpop.f32.mrb[6].mxu0 }
 0x2e4   : > { %v1041_v38 = vpop.f32.mrb[7].mxu0  ;;  %v477_v19 = vsel %vm248_vm4, %v476_v18, 0.0 }
 0x2e9   : > { %v551_v41 = vpop.f32.mrb[8].mxu0 }
 0x2ea   : > { %v569_v42 = vmul.f32 %v1126_v40, %v551_v41  ;;  %v1046_v43 = vpop.f32.mrb[9].mxu0 }
 0x2eb   : > { %v554_v45 = vpop.f32.mrb[10].mxu0 }
 0x2ec   : > { %v570_v46 = vpack.c.bf16 %v569_v42, %v569_v42  ;;  %v1047_v47 = vpop.f32.mrb[11].mxu0 }
 0x2ee   : > { %1051 = vmatmul.mubr.msk.bf16.vlgmr.msra.gmra.mrb[4].mxu1 %vm248_vm4, %v570_v46 }
 0x2ef   : > { %1061 = vmatpush3.bf16.msra.mxu1 %v718_v48  ;;  %1062 = vmatprep.mubr.msk.bf16.mxu1 %vm1149_vm0, %v1148_v1 }
 0x2f0   : > { %1072 = vmatprep.subr.bf16.mxu1 %v1148_v1 }
 0x2f1   : > { %v692_v49 = vpop.f32.mrb[12].mxu0 }
 0x2f2   : > { %v710_v51 = vmul.f32 %v1128_v26, %v692_v49  ;;  %v1058_v52 = vpop.f32.mrb[13].mxu0 }
 0x2f3   : > { %v695_v53 = vpop.f32.mrb[14].mxu0 }
 0x2f4   : > { %v711_v54 = vpack.c.bf16 %v710_v51, %v710_v51  ;;  %v1059_v55 = vpop.f32.mrb[15].mxu0 }
 0x2f6   : > { %1063 = vmatmul.mubr.msk.bf16.vlgmr.msra.gmra.mrb[8].mxu1 %vm248_vm4, %v711_v54 }
 0x2f7   : > { %1073 = vmatpush3.bf16.msra.mxu1 %v859_v56  ;;  %1074 = vmatprep.mubr.msk.bf16.mxu1 %vm1149_vm0, %v1148_v1 }
 0x2f9   : > { %v833_v58 = vpop.f32.mrb[16].mxu0 }
 0x2fa   : > { %v851_v59 = vmul.f32 %v1130_v57, %v833_v58  ;;  %v1070_v60 = vpop.f32.mrb[17].mxu0 }
 0x2fb   : > { %v836_v61 = vpop.f32.mrb[18].mxu0 }
 0x2fc   : > { %v852_v62 = vpack.c.bf16 %v851_v59, %v851_v59  ;;  %v1071_v63 = vpop.f32.mrb[19].mxu0 }
 0x2fe   : > { %1075 = vmatmul.mubr.msk.bf16.vlgmr.msra.gmra.mrb[12].mxu1 %vm248_vm4, %v852_v62 }
 0x3c1   : > { %v613_v0 = vpop.f32.mrb[4].mxu1 }
 0x3c2   : > { %v619_v2 = vmul.f32 %v613_v0, %v613_v0  ;;  %v1052_v3 = vpop.f32.mrb[5].mxu1 }
 0x3c3   : > { %v616_v4 = vpop.f32.mrb[6].mxu1 }
 0x3c4   : > { %v1053_v5 = vpop.f32.mrb[7].mxu1  ;;  %v620_v6 = vsel %vm248_vm4, %v619_v2, 0.0 }
 0x3c5   : > { %621 = vadd.xlane.f32.xlu0 %v620_v6 }
 0x3c9   : > { %v754_v7 = vpop.f32.mrb[8].mxu1 }
 0x3ca   : > { %v760_v8 = vmul.f32 %v754_v7, %v754_v7  ;;  %v1064_v1 = vpop.f32.mrb[9].mxu1 }
 0x3cb   : > { %v757_v9 = vpop.f32.mrb[10].mxu1 }
 0x3cc   : > { %v1065_v10 = vpop.f32.mrb[11].mxu1  ;;  %v761_v11 = vsel %vm248_vm4, %v760_v8, 0.0 }
 0x3cd   : > { %762 = vadd.xlane.f32.xlu1 %v761_v11 }
 0x3d1   : > { %v895_v12 = vpop.f32.mrb[12].mxu1 }
 0x3d2   : > { %v901_v13 = vmul.f32 %v895_v12, %v895_v12  ;;  %v1076_v14 = vpop.f32.mrb[13].mxu1 }
 0x3d3   : > { %v898_v15 = vpop.f32.mrb[14].mxu1 }
 0x3d4   : > { %v1077_v16 = vpop.f32.mrb[15].mxu1  ;;  %v902_v17 = vsel %vm248_vm4, %v901_v13, 0.0 }
 0x3d5   : > { %903 = vadd.xlane.f32.xlu0 %v902_v17 }
 0x3de   : > { %769 = vrot.lane.b32.xlu1 %v1234_v34, %s1164_s10 }
 0x3e2   : > { %493 = vrot.lane.b32.xlu1 %v1234_v34, %s1165_s11 }
 0x3eb   : > { %628 = vrot.lane.b32.xlu0 %v1234_v34, %s1166_s12 }
 0x3ef   : > { %910 = vrot.lane.b32.xlu0 %v1234_v34, %s1167_s13 }
 0x40e   : > { %478 = vadd.xlane.f32.xlu0 %v477_v19 }
 0x452   : > { %v622_v21 = vpop.xlane.xlu0 %621 }
 0x453   : > { %v623_v22 = vmul.f32 0.125, %v622_v21 }
 0x455   : > { %v624_v23 = vadd.f32 1e-05, %v623_v22 }
 0x457   : > { %1131 = vrsqrt.f32 %v624_v23 }
 0x45a   : > { %v763_v24 = vpop.xlane.xlu1 %762 }
 0x45b   : > { %v764_v25 = vmul.f32 0.125, %v763_v24 }
 0x45d   : > { %v765_v27 = vadd.f32 1e-05, %v764_v25 }
 0x45e   : > { %v770_v41 = vpop.permute.xlu1 %769 }
 0x45f   : > { %1133 = vrsqrt.f32 %v765_v27 }
 0x461   : > { %v1132_v28 = vpop.eup %1131 }
 0x462   : > { %v904_v34 = vpop.xlane.xlu0 %903  ;;  %v626_v30 = vmul.f32 %v1132_v28, %v613_v0  ;;  %v494_v54 = vpop.permute.xlu1 %493 }
 0x463   : > { %v905_v31 = vmul.f32 0.125, %v904_v34 }
 0x464   : > { %v627_v33 = vmul.f32 %v991_v29, %v626_v30 }
 0x465   : > { %v906_v35 = vadd.f32 1e-05, %v905_v31 }
 0x466   : > { %v629_v36 = vpop.permute.xlu0 %628 }
 0x467   : > { %1135 = vrsqrt.f32 %v906_v35  ;;  %v631_v37 = vmul.f32 %v629_v36, %v627_v33 }
 0x469   : > { %v1134_v38 = vpop.eup %1133  ;;  %v1004_v39 = vpack.c.bf16 %v631_v37, %v631_v37 }
 0x46a   : > { %v767_v40 = vmul.f32 %v1134_v38, %v754_v7  ;;  %v911_v46 = vpop.permute.xlu0 %910 }
 0x46b   : > { %636 = vrot.lane.b32.xlu1 %v1004_v39, %s1167_s13 }
 0x46c   : > { %v768_v20 = vmul.f32 %v991_v29, %v767_v40 }
 0x46e   : > { %v772_v42 = vmul.f32 %v770_v41, %v768_v20 }
 0x470   : > { %v1005_v43 = vpack.c.bf16 %v772_v42, %v772_v42 }
 0x471   : > { %v1136_v44 = vpop.eup %1135 }
 0x472   : > { %777 = vrot.lane.b32.xlu1 %v1005_v43, %s1164_s10  ;;  %v908_v45 = vmul.f32 %v1136_v44, %v895_v12 }
 0x474   : > { %v909_v47 = vmul.f32 %v991_v29, %v908_v45 }
 0x476   : > { %v913_v48 = vmul.f32 %v911_v46, %v909_v47 }
 0x478   : > { %v1006_v26 = vpack.c.bf16 %v913_v48, %v913_v48 }
 0x47a   : > { %918 = vrot.lane.b32.xlu1 %v1006_v26, %s1166_s12 }
 0x49b   : > { %v479_v49 = vpop.xlane.xlu0 %478 }
 0x49c   : > { %v481_v50 = vmul.f32 0.125, %v479_v49 }
 0x49e   : > { %v482_v51 = vadd.f32 1e-05, %v481_v50 }
 0x4a0   : > { %1137 = vrsqrt.f32 %v482_v51 }
 0x4aa   : > { %v1138_v52 = vpop.eup %1137 }
 0x4ab   : > { %v484_v53 = vmul.f32 %v1138_v52, %v1277_v32 }
 0x4ad   : > { %v491_v55 = vmul.f32 %v991_v29, %v484_v53 }
 0x4af   : > { %v496_v56 = vmul.f32 %v494_v54, %v491_v55 }
 0x4b1   : > { %v497_v57 = vpack.c.bf16 %v496_v56, %v496_v56 }
 0x4b3   : > { %499 = vst.msk [vmem:[%s195_s21] sm:$0xf] %vm498_vm6, %v497_v57 }
 0x4dd   : > { %v637_v58 = vpop.permute.xlu1 %636 }
 0x4de   : > { %640 = vst.msk [vmem:[%s195_s21] sm:$0xf] %vm639_vm7, %v637_v58 }
 0x4e4   : > { %v778_v59 = vpop.permute.xlu1 %777 }
 0x4e5   : > { %781 = vst.msk [vmem:[%s195_s21] sm:$0xf] %vm780_vm8, %v778_v59 }
 0x4ec   : > { %v919_v60 = vpop.permute.xlu1 %918 }
 0x4ed   : > { %922 = vst.msk [vmem:[%s195_s21] sm:$0xf] %vm921_vm9, %v919_v60 }
 0x4ee PF: > { %s14_s15 = sadd.s32 1, %s1145_s15  }
 0x4ef   : > { %p11_p4 = scmp.ge.s32.totalorder %s14_s15, 4  }
 0x4f1   :  { %13 = sbr.rel (!%p11_p4) target bundleno = 1 (0x1), region = 66 }

</bundles_post_ra>
